<compile_context>
chip_gen: v5e
topology: v5e:2x2
jax: 0.10.0
libtpu: 0.0.40
codegen_flags: <defaults>
</compile_context>

<pallas_src>
import math

import jax
import jax.numpy as jnp
import numpy as np
from jax.experimental import pallas as pl
from jax.experimental.pallas import tpu as pltpu

_LANE = 128


def _round_up(x, m):
    return (x + m - 1) // m * m


def _packing(d):
    """Pack factor P (logical rows per 128-lane row) and padded lane width L."""
    if d <= _LANE and _LANE % d == 0:
        return _LANE // d, _LANE
    return 1, _round_up(d, _LANE)


def _pack_rows(a2d, rows_pad, p, l, d):
    """(M, D) -> (rows_pad, L) lane-dense slab.  Free reshape when no pad needed."""
    m = a2d.shape[0]
    if p * d == l:
        flat = a2d.reshape(-1)
        need = rows_pad * l
        if flat.shape[0] != need:
            flat = jnp.pad(flat, (0, need - flat.shape[0]))
        return flat.reshape(rows_pad, l)
    if m != rows_pad or d != l:
        return jnp.pad(a2d, ((0, rows_pad - m), (0, l - d)))
    return a2d


def _unpack_rows(out_p, m, p, l, d):
    if p * d == l:
        flat = out_p.reshape(-1)
        if flat.shape[0] != m * d:
            flat = flat[: m * d]
        return flat.reshape(m, d)
    return out_p[:m, :d]


# ----------------------------------------------------------------------------
# Kernels (both operate on the packed (TM, L) layout).
# ----------------------------------------------------------------------------
def _addeps_kernel(x_ref, eps_ref, w_ref, b_ref, o_ref):
    """eps supplied as an input (default path; exact-check path uses f32 weight)."""
    eps = eps_ref[...].astype(w_ref.dtype)            # bf16 on the fast path (MXU)
    h = jnp.dot(eps, w_ref[...], preferred_element_type=jnp.float32)   # f32 accumulate
    h = jnp.tanh(h + b_ref[...])                       # VPU + EUP, f32
    o_ref[...] = (h + x_ref[...].astype(jnp.float32)).astype(o_ref.dtype)


def _addeps_hw_rng_kernel(seed_ref, x_ref, w_ref, b_ref, o_ref):
    """Optional TPU-only path: draw eps ~ N(0,1) on-chip (no eps HBM stream).

    Only reachable when jax.default_backend() == "tpu" (prng_seed has no CPU
    lowering).  The tile index is mixed in as a second seed word so adjacent
    tiles do not get adjacent-integer seeds.
    """
    pltpu.prng_seed(seed_ref[0], pl.program_id(0))
    # TODO(synk): on v6e/v7x drawing bf16 normals (or a VPU-only approximate
    # normal from prng_random_bits) would halve/remove the Box-Muller EUP load;
    # kept f32 here since it cannot be validated in this environment (v5e has
    # no bf16 EUP and the harness interprets on CPU).
    eps = pltpu.stateful_normal(x_ref.shape, jnp.float32)
    h = jnp.dot(eps.astype(w_ref.dtype), w_ref[...], preferred_element_type=jnp.float32)
    h = jnp.tanh(h + b_ref[...])
    o_ref[...] = (h + x_ref[...].astype(jnp.float32)).astype(o_ref.dtype)


# ----------------------------------------------------------------------------
# Wrapper
# ----------------------------------------------------------------------------
def add_eps_pallas(x, weight, bias, *, eps=None, key=None, hw_rng_seed=None,
                   block_rows=4096, mxu_dtype=jnp.bfloat16):
    """AddEps forward.

    x: (..., D); weight: (D, D) in PyTorch (out, in) layout; bias: (D,).
      eps=array     -> deterministic path (use mxu_dtype=jnp.float32 for exact checks).
      key=PRNGKey   -> eps drawn by jax.random in the packed layout (default path).
      hw_rng_seed=n -> eps drawn in-kernel by the TPU hardware PRNG (TPU backend
                       only; distribution, not the torch/jax bitstream, is the contract).
    """
    orig_shape = x.shape
    d = orig_shape[-1]
    m = int(np.prod(orig_shape[:-1], dtype=np.int64)) if len(orig_shape) > 1 else 1

    p, l = _packing(d)
    rows_packed = pl.cdiv(m, p)
    rows_pad = _round_up(rows_packed, 8)          # sublane multiple only, never tm

    # Row tile: big enough to amortize the ~0.35us/step grid overhead, but
    # clamped so the "parallel" axis has >= 2 steps whenever there is enough
    # work (v7x's two TensorCores each need a step).  Double-buffered working
    # set at tm=4096: 3 arrays x 2 bufs x 4096 x 128 x 4B ~= 12.6 MiB.
    tm = min(block_rows, rows_pad)
    if rows_pad >= 16:
        tm = min(tm, _round_up(pl.cdiv(rows_pad, 2), 8))
    tm = max(8, _round_up(tm, 8))
    grid = (pl.cdiv(rows_pad, tm),)               # ragged last block masked by Pallas

    x_p = _pack_rows(x.reshape(m, d), rows_pad, p, l, d)

    # Block-diagonal (L, L) weight holding P copies of W^T (bf16 on the fast
    # path so the MXU runs at its narrow-input rate); bias stays f32 since it
    # is added to the f32 accumulator.  Built once, VMEM-resident across steps.
    w_t = weight.T.astype(jnp.float32)
    w_big = jnp.zeros((l, l), jnp.float32)
    b_big = jnp.zeros((l,), jnp.float32)
    for q in range(p):
        w_big = w_big.at[q * d:(q + 1) * d, q * d:(q + 1) * d].set(w_t)
        b_big = b_big.at[q * d:(q + 1) * d].set(bias.astype(jnp.float32))
    w_big = w_big.astype(mxu_dtype)
    b_big = b_big.reshape(1, l)

    compiler_params = pltpu.CompilerParams(dimension_semantics=("parallel",))
    out_shape = jax.ShapeDtypeStruct((rows_pad, l), x.dtype)
    itemsize = np.dtype(x.dtype).itemsize
    w_bytes = l * l * np.dtype(mxu_dtype).itemsize + l * 4
    flops = 2 * rows_pad * l * l

    use_hw_rng = (eps is None and hw_rng_seed is not None
                  and jax.default_backend() == "tpu")

    if use_hw_rng:
        cost = pl.CostEstimate(
            flops=flops,
            transcendentals=4 * rows_pad * l,             # Box-Muller (~3/elt) + tanh
            bytes_accessed=2 * rows_pad * l * itemsize + w_bytes)
        seed_arr = jnp.asarray([hw_rng_seed], dtype=jnp.int32)
        out_p = pl.pallas_call(
            _addeps_hw_rng_kernel,
            out_shape=out_shape,
            grid_spec=pltpu.PrefetchScalarGridSpec(
                num_scalar_prefetch=1,
                grid=grid,
                in_specs=[
                    pl.BlockSpec((tm, l), lambda i, s: (i, 0)),   # x tile
                    pl.BlockSpec((l, l), lambda i, s: (0, 0)),    # weight (resident)
                    pl.BlockSpec((1, l), lambda i, s: (0, 0)),    # bias (resident)
                ],
                out_specs=pl.BlockSpec((tm, l), lambda i, s: (i, 0)),
            ),
            compiler_params=compiler_params,
            cost_estimate=cost,
        )(seed_arr, x_p, w_big, b_big)
    else:
        if eps is not None:
            eps_p = _pack_rows(eps.reshape(m, d).astype(jnp.float32), rows_pad, p, l, d)
        else:
            if key is None:
                key = jax.random.PRNGKey(0 if hw_rng_seed is None else int(hw_rng_seed))
            # iid noise -> draw it directly in the packed layout (no pad/copy pass).
            eps_p = jax.random.normal(key, (rows_pad, l), dtype=jnp.float32)
        cost = pl.CostEstimate(
            flops=flops,
            transcendentals=rows_pad * l,                 # tanh
            bytes_accessed=(2 * itemsize + 4) * rows_pad * l + w_bytes)
        out_p = pl.pallas_call(
            _addeps_kernel,
            out_shape=out_shape,
            grid=grid,
            in_specs=[
                pl.BlockSpec((tm, l), lambda i: (i, 0)),   # x tile
                pl.BlockSpec((tm, l), lambda i: (i, 0)),   # eps tile
                pl.BlockSpec((l, l), lambda i: (0, 0)),    # weight (resident)
                pl.BlockSpec((1, l), lambda i: (0, 0)),    # bias (resident)
            ],
            out_specs=pl.BlockSpec((tm, l), lambda i: (i, 0)),
            compiler_params=compiler_params,
            cost_estimate=cost,
        )(x_p, eps_p, w_big, b_big)

    return _unpack_rows(out_p, m, p, l, d).reshape(orig_shape)


if __name__ == "__main__":
    # Shapes consistent with the module: dim_rnn = 32, batch = 2, seq = 8.
    dim_rnn = 32
    B, T = 2, 8

    root = jax.random.PRNGKey(0)
    k_x, k_eps, k_w, k_b, k_x2, k_eps2, k_x3, k_eps3, k_noise = jax.random.split(root, 9)

    # nn.Linear-style init (uniform(-1/sqrt(in), 1/sqrt(in))), PyTorch (out, in) layout.
    bound = 1.0 / math.sqrt(dim_rnn)
    weight = jax.random.uniform(k_w, (dim_rnn, dim_rnn), minval=-bound, maxval=bound,
                                dtype=jnp.float32)
    bias = jax.random.uniform(k_b, (dim_rnn,), minval=-bound, maxval=bound,
                              dtype=jnp.float32)

    def ref_fn(xx, ee):
        return jnp.tanh(ee @ weight.T + bias) + xx

    # --- 1) Exact check: explicit eps, f32 MXU, single grid step.
    x = jax.random.normal(k_x, (B, T, dim_rnn), dtype=jnp.float32)
    eps = jax.random.normal(k_eps, x.shape, dtype=jnp.float32)
    out = jax.block_until_ready(
        add_eps_pallas(x, weight, bias, eps=eps, mxu_dtype=jnp.float32))
    np.testing.assert_allclose(np.asarray(out), np.asarray(ref_fn(x, eps)),
                               rtol=1e-5, atol=1e-5)

    # --- 2) Partial last packed row (M=111 not a multiple of pack factor 4) + multi-step grid.
    x2 = jax.random.normal(k_x2, (3, 37, dim_rnn), dtype=jnp.float32)
    eps2 = jax.random.normal(k_eps2, x2.shape, dtype=jnp.float32)
    out2 = jax.block_until_ready(
        add_eps_pallas(x2, weight, bias, eps=eps2, mxu_dtype=jnp.float32, block_rows=8))
    np.testing.assert_allclose(np.asarray(out2), np.asarray(ref_fn(x2, eps2)),
                               rtol=1e-5, atol=1e-5)

    # --- 3) Ragged last grid block: 56 packed rows, tm=16 -> 4 steps, last block half-valid.
    x3 = jax.random.normal(k_x3, (5, 40, dim_rnn), dtype=jnp.float32)
    eps3 = jax.random.normal(k_eps3, x3.shape, dtype=jnp.float32)
    out3 = jax.block_until_ready(
        add_eps_pallas(x3, weight, bias, eps=eps3, mxu_dtype=jnp.float32, block_rows=16))
    np.testing.assert_allclose(np.asarray(out3), np.asarray(ref_fn(x3, eps3)),
                               rtol=1e-5, atol=1e-5)

    # --- 4) Fast-path numerics: bf16 MXU inputs, f32 accumulate/tanh (loose tolerance).
    out_bf16 = jax.block_until_ready(add_eps_pallas(x, weight, bias, eps=eps))
    np.testing.assert_allclose(np.asarray(out_bf16), np.asarray(ref_fn(x, eps)),
                               rtol=0, atol=5e-2)

    # --- 5) Default noise path: eps drawn by the wrapper directly in the packed layout.
    #     (Distribution, not the torch/jax bitstream, is the contract.)
    out_rng = jax.block_until_ready(add_eps_pallas(x, weight, bias, key=k_noise))
    delta = np.asarray(out_rng) - np.asarray(x)          # = tanh(eps @ W.T + b)
    assert out_rng.shape == x.shape and out_rng.dtype == x.dtype
    assert np.all(np.isfinite(delta))
    assert np.max(np.abs(delta)) <= 1.0 + 1e-5           # tanh-bounded
    assert np.std(delta) > 1e-3                          # noise actually injected

    print("KERNEL_OK")
</pallas_src>

<mosaic_0001>
module attributes {stable_mosaic.version = 11 : i64} {
  func.func @_addeps_kernel(%arg0: i32, %arg1: memref<8x128xf32, #tpu.memory_space<vmem>>, %arg2: memref<8x128xf32, #tpu.memory_space<vmem>>, %arg3: memref<128x128xf32, #tpu.memory_space<vmem>>, %arg4: memref<1x128xf32, #tpu.memory_space<vmem>>, %arg5: memref<8x128xf32, #tpu.memory_space<vmem>>) attributes {dimension_semantics = [#tpu.dimension_semantics<parallel>], iteration_bounds = array<i64: 1>, scalar_prefetch = 0 : i64, scratch_operands = 0 : i64, tpu.core_type = #tpu.core_type<tc>, window_params = [{transform_indices = @transform_0, window_bounds = array<i64: 8, 128>}, {transform_indices = @transform_1, window_bounds = array<i64: 8, 128>}, {pipeline_mode = #tpu.pipeline_mode<synchronous>, transform_indices = @transform_2, window_bounds = array<i64: 128, 128>}, {pipeline_mode = #tpu.pipeline_mode<synchronous>, transform_indices = @transform_3, window_bounds = array<i64: 1, 128>}, {transform_indices = @transform_4, window_bounds = array<i64: 8, 128>}]} {
    %c0 = arith.constant 0 : index
    %c0_0 = arith.constant 0 : index
    %0 = vector.load %arg2[%c0, %c0_0] : memref<8x128xf32, #tpu.memory_space<vmem>>, vector<8x128xf32>
    %c0_1 = arith.constant 0 : index
    %c0_2 = arith.constant 0 : index
    %1 = vector.load %arg3[%c0_1, %c0_2] : memref<128x128xf32, #tpu.memory_space<vmem>>, vector<128x128xf32>
    %cst = arith.constant dense<0.000000e+00> : vector<8x128xf32>
    %2 = tpu.matmul %0, %1, %cst {dimension_numbers = #tpu.dot_dimension_numbers<[1], [0], [0], [1], [0, 0, 1, 1], [], []>} : vector<8x128xf32>, vector<128x128xf32>, vector<8x128xf32> -> vector<8x128xf32>
    %c0_3 = arith.constant 0 : index
    %c0_4 = arith.constant 0 : index
    %3 = vector.load %arg4[%c0_3, %c0_4] : memref<1x128xf32, #tpu.memory_space<vmem>>, vector<1x128xf32>
    %4 = vector.broadcast %3 : vector<1x128xf32> to vector<8x128xf32>
    %5 = arith.addf %2, %4 : vector<8x128xf32>
    %6 = math.tanh %5 : vector<8x128xf32>
    %c0_5 = arith.constant 0 : index
    %c0_6 = arith.constant 0 : index
    %7 = vector.load %arg1[%c0_5, %c0_6] : memref<8x128xf32, #tpu.memory_space<vmem>>, vector<8x128xf32>
    %8 = arith.addf %6, %7 : vector<8x128xf32>
    %c0_7 = arith.constant 0 : index
    %c0_8 = arith.constant 0 : index
    %9 = vector.load %arg5[%c0_7, %c0_8] : memref<8x128xf32, #tpu.memory_space<vmem>>, vector<8x128xf32>
    tpu.vector_store %arg5[%c0_7, %c0_8], %8 {strides = array<i32>} : memref<8x128xf32, #tpu.memory_space<vmem>>, vector<8x128xf32>,
    return
  }
  func.func @transform_0(%arg0: i32) -> (i32, i32) {
    %c0_i32 = arith.constant 0 : i32
    %c0_i32_0 = arith.constant 0 : i32
    return %arg0, %c0_i32 : i32, i32
  }
  func.func @transform_1(%arg0: i32) -> (i32, i32) {
    %c0_i32 = arith.constant 0 : i32
    %c0_i32_0 = arith.constant 0 : i32
    return %arg0, %c0_i32 : i32, i32
  }
  func.func @transform_2(%arg0: i32) -> (i32, i32) {
    %c0_i32 = arith.constant 0 : i32
    %c0_i32_0 = arith.constant 0 : i32
    %c0_i32_1 = arith.constant 0 : i32
    return %c0_i32, %c0_i32_0 : i32, i32
  }
  func.func @transform_3(%arg0: i32) -> (i32, i32) {
    %c0_i32 = arith.constant 0 : i32
    %c0_i32_0 = arith.constant 0 : i32
    %c0_i32_1 = arith.constant 0 : i32
    return %c0_i32, %c0_i32_0 : i32, i32
  }
  func.func @transform_4(%arg0: i32) -> (i32, i32) {
    %c0_i32 = arith.constant 0 : i32
    %c0_i32_0 = arith.constant 0 : i32
    return %arg0, %c0_i32 : i32, i32
  }
}

</mosaic_0001>

<bundles_post_ra>
// kernel: tpu_custom_call.1
= control target key start
LH: loop header
LB: loop body
LE: loop exit
PB: predicated region body
PF: predicated region fallthrough
CT: control target
= control target key end

     0   :  { %9 = vsyncpa [#allocation3], 0  ;;  %s281_s0 = inlined_call_operand.hbm [shape: f32[8,128], index: 0, kind: input, shape index: {}]   ;;  %s282_s1 = inlined_call_operand.hbm [shape: f32[8,128], index: 1, kind: input, shape index: {}]   ;;  %s283_s2 = inlined_call_operand.hbm [shape: f32[128,128], index: 2, kind: input, shape index: {}]   ;;  %s284_s3 = inlined_call_operand.vmem [shape: f32[1,128], index: 3, kind: input, shape index: {}]   ;;  %s285_s4 = inlined_call_operand.hbm [shape: f32[8,128], index: 4, kind: output, shape index: {}]  }
   0x1   :  { %10 = vsyncpa [#allocation6], 0  ;;  %s28_s17 = sshll.u32 %s282_s1, 4  ;;  %s29_s17 = int_to_ptr.hbm [resolvable:$true] %s28_s17 }
   0x2   :  { %11 = vsyncpa [#allocation4], 0  ;;  %s235_s18 = smov [#allocation5]   ;;  %s17_s22 = sshll.u32 %s281_s0, 4  ;;  %s18_s22 = int_to_ptr.hbm [resolvable:$true] %s17_s22 }
   0x3   :  { %s30_s19 = sshll.u32 %s235_s18, 4  ;;  %s236_s23 = smov [#allocation2]   ;;  %s31_s19 = int_to_ptr.vmem [resolvable:$true] %s30_s19 }
   0x4   :  { %33 = dma.hbm_to_vmem [thread:$0]  %s29_s17, 128, %s31_s19, [#allocation6]  }
   0x5   :  { %s19_s24 = sshll.u32 %s236_s23, 4  ;;  %s38_s27 = sshll.u32 %s283_s2, 4  ;;  %s20_s24 = int_to_ptr.vmem [resolvable:$true] %s19_s24  ;;  %s39_s27 = int_to_ptr.hbm [resolvable:$true] %s38_s27 }
   0x6   :  { %22 = dma.hbm_to_vmem [thread:$0]  %s18_s22, 128, %s20_s24, [#allocation3]  }
   0x7   :  { %s237_s1 = smov [#allocation7]   ;;  %s238_s29 = smov 128  }
   0x8   :  { %s40_s28 = sshll.u32 %s237_s1, 4  ;;  %s239_s30 = smov 8   ;;  %s41_s28 = int_to_ptr.vmem [resolvable:$true] %s40_s28 }
   0x9   :  { %46 = dma.hbm_to_vmem [thread:$0]  %s39_s27, 2048, %s41_s28, [#allocation6], %s238_s29, %s238_s29, %s239_s30  }
   0xa   :  { %229 = dma.done.wait [#allocation3], 128  }
   0xb   :  { %230 = vsyncadd [#allocation3], 4294967168 }
   0xc   :  { %231 = dma.done.wait [#allocation6], 2176  }
   0xd   :  { %232 = vsyncadd [#allocation6], 4294965120  ;;  %v77_v0 = vld [vmem:[#allocation7 + $0x78] sm:$0xff]  ;;  %v76_v1 = vld [vmem:[#allocation7 + $0x70] sm:$0xff]  ;;  %s240_s5 = smov [#allocation8]   ;;  %s113_s9 = sshll.u32 %s285_s4, 4  ;;  %s114_s9 = int_to_ptr.hbm [resolvable:$true] %s113_s9 }
   0xe   :  { %82 = vmatpush.msra.mxu0 %v77_v0  ;;  %v75_v2 = vld [vmem:[#allocation7 + $0x68] sm:$0xff]  ;;  %v74_v3 = vld [vmem:[#allocation7 + $0x60] sm:$0xff]  ;;  %v73_v4 = vld [vmem:[#allocation7 + $0x58] sm:$0xff]  ;;  %s111_s6 = sshll.u32 %s240_s5, 4  ;;  %s112_s6 = int_to_ptr.vmem [resolvable:$true] %s111_s6 }
   0xf   :  { %v72_v5 = vld [vmem:[#allocation7 + $0x50] sm:$0xff]  ;;  %v71_v6 = vld [vmem:[#allocation7 + $0x48] sm:$0xff]  ;;  %v70_v7 = vld [vmem:[#allocation7 + $0x40] sm:$0xff] }
  0x10   :  { %83 = vmatpush.msra.mxu0 %v76_v1  ;;  %v69_v8 = vld [vmem:[#allocation7 + $0x38] sm:$0xff]  ;;  %v68_v9 = vld [vmem:[#allocation7 + $0x30] sm:$0xff]  ;;  %v67_v10 = vld [vmem:[#allocation7 + $0x28] sm:$0xff] }
  0x11   :  { %v66_v11 = vld [vmem:[#allocation7 + $0x20] sm:$0xff]  ;;  %v65_v12 = vld [vmem:[#allocation7 + $0x18] sm:$0xff]  ;;  %v64_v13 = vld [vmem:[#allocation7 + $0x10] sm:$0xff] }
  0x12   :  { %84 = vmatpush.msra.mxu0 %v75_v2  ;;  %v63_v14 = vld [vmem:[#allocation7 + $0x8] sm:$0xff]  ;;  %v62_v15 = vld [vmem:[#allocation7] sm:$0xff]  ;;  %v61_v16 = vld [vmem:[#allocation5] sm:$0xff] }
  0x13   :  { %v130_v17 = vld [vmem:[%s284_s3] ss:$0 sm:$0xff] }
  0x14   :  { %85 = vmatpush.msra.mxu0 %v74_v3  ;;  %v103_v20 = vld [vmem:[#allocation2] sm:$0xff] }
  0x16   :  { %86 = vmatpush.msra.mxu0 %v73_v4 }
  0x18   :  { %87 = vmatpush.msra.mxu0 %v72_v5 }
  0x1a   :  { %88 = vmatpush.msra.mxu0 %v71_v6 }
  0x1c   :  { %89 = vmatpush.msra.mxu0 %v70_v7 }
  0x1e   :  { %90 = vmatpush.msra.mxu0 %v69_v8 }
  0x20   :  { %91 = vmatpush.msra.mxu0 %v68_v9 }
  0x22   :  { %92 = vmatpush.msra.mxu0 %v67_v10 }
  0x24   :  { %93 = vmatpush.msra.mxu0 %v66_v11 }
  0x26   :  { %94 = vmatpush.msra.mxu0 %v65_v12 }
  0x28   :  { %95 = vmatpush.msra.mxu0 %v64_v13 }
  0x2a   :  { %96 = vmatpush.msra.mxu0 %v63_v14 }
  0x2c   :  { %97 = vmatpush.msra.mxu0 %v62_v15 }
  0x2d   :  { %98 = vmatmul.f32.vlgmr.msra.gmra.mxu0 %v61_v16 }
  0xaa   :  { %v99_v18 = vpop.f32.mrf.mxu0 }
  0xab   :  { %v100_v19 = vadd.f32 %v130_v17, %v99_v18 }
  0xad   :  { %131 = vtanh.f32 %v100_v19 }
  0xb3   :  { %v132_v21 = vpop.eup %131 }
  0xb4   :  { %v104_v22 = vadd.f32 %v132_v21, %v103_v20 }
  0xb6   :  { %105 = vst [vmem:[#allocation8] sm:$0xff] %v104_v22 }
  0xb7   :  { %116 = dma.vmem_to_hbm [thread:$0]  %s112_s6, 128, %s114_s9, [#allocation4]  }
  0xb8   :  { %233 = dma.done.wait [#allocation4], 128  }
  0xb9   :  { %234 = vsyncadd [#allocation4], 4294967168 }
  0xba   :  { %121 = vsyncpa [#allocation3], 1 }
  0xbb   :  { %122 = vsyncpa [#allocation6], 1 }
  0xbc   :  { %123 = vsyncpa [#allocation4], 1 }

</bundles_post_ra>
